<compile_context>
chip_gen: v7x
topology: tpu7x:2x2x1
jax: 0.10.0
libtpu: 0.0.40
codegen_flags: <defaults>
</compile_context>

<pallas_src>
import functools
import math

import jax
import jax.numpy as jnp
from jax.experimental import pallas as pl
from jax.experimental.pallas import tpu as pltpu


def _round_up(x, m):
    return ((x + m - 1) // m) * m


def _lcm(a, b):
    return a * b // math.gcd(a, b)


# --------------------------------------------------------------------------
# Kernels
# --------------------------------------------------------------------------
def _encoder_kernel_resident(adj_ref, feat_ref, inv_deg_ref,
                             w_self_ref, w_neigh_ref, out_ref, acc_ref,
                             *, tile_n, tile_k):
    """Feature table resident in VMEM; grid point (i, k) = (node tile, K tile)."""
    i = pl.program_id(0)
    k = pl.program_id(1)

    @pl.when(k == 0)
    def _():
        acc_ref[...] = jnp.zeros_like(acc_ref)
        # Self-feature matmul hoisted to the first K step so it overlaps the
        # adjacency DMAs of the remaining steps (output block index is
        # constant along k, so out_ref stays VMEM-resident until i changes).
        row0 = pl.multiple_of(i * tile_n, tile_n)
        self_feats = feat_ref[pl.ds(row0, tile_n), :]
        out_ref[...] = jnp.dot(self_feats, w_self_ref[...],
                               preferred_element_type=jnp.float32)

    # Neighbour-sum accumulation: int8 adjacency upcast on the VPU (free
    # filler under a DMA-bound roofline); features sliced from the resident
    # table; f32 accumulation.
    col0 = pl.multiple_of(k * tile_k, tile_k)
    feat_blk = feat_ref[pl.ds(col0, tile_k), :]
    acc_ref[...] += jnp.dot(adj_ref[...].astype(feat_blk.dtype), feat_blk,
                            preferred_element_type=jnp.float32)

    @pl.when(k == pl.num_programs(1) - 1)
    def _():
        # Mean aggregation via precomputed clamped-degree reciprocal.
        neigh = (acc_ref[...] * inv_deg_ref[...]).astype(w_neigh_ref.dtype)
        out = out_ref[...] + jnp.dot(neigh, w_neigh_ref[...],
                                     preferred_element_type=jnp.float32)
        out_ref[...] = jnp.maximum(out, 0.0).astype(out_ref.dtype)


def _encoder_kernel_streamed(adj_ref, nfeat_ref, sfeat_ref, inv_deg_ref,
                             w_self_ref, w_neigh_ref, out_ref, acc_ref):
    """Fallback: feature table streamed as (tile_k, F_p) blocks along k."""
    k = pl.program_id(1)

    @pl.when(k == 0)
    def _():
        acc_ref[...] = jnp.zeros_like(acc_ref)
        out_ref[...] = jnp.dot(sfeat_ref[...], w_self_ref[...],
                               preferred_element_type=jnp.float32)

    acc_ref[...] += jnp.dot(adj_ref[...].astype(nfeat_ref.dtype),
                            nfeat_ref[...],
                            preferred_element_type=jnp.float32)

    @pl.when(k == pl.num_programs(1) - 1)
    def _():
        neigh = (acc_ref[...] * inv_deg_ref[...]).astype(w_neigh_ref.dtype)
        out = out_ref[...] + jnp.dot(neigh, w_neigh_ref[...],
                                     preferred_element_type=jnp.float32)
        out_ref[...] = jnp.maximum(out, 0.0).astype(out_ref.dtype)


# --------------------------------------------------------------------------
# Wrappers
# --------------------------------------------------------------------------
def prepare_encoder_inputs(features, adj, weight, *, tile_n, tile_k,
                           compute_dtype=jnp.bfloat16):
    """Pad / cast the graph-constant operands.

    Cache the result across calls when the graph & weights are fixed — this
    amortizes the pad/cast HBM traffic (roughly the size of the kernel's own
    adjacency stream).
    """
    N, F = features.shape
    E = weight.shape[1]
    assert weight.shape[0] == 2 * F, "weight must be [2*feature_dim, embed_dim]"

    N_p = _round_up(N, _lcm(tile_n, tile_k))
    F_p = _round_up(F, 128)
    E_p = _round_up(E, 128)

    # Exact f32 degree reciprocal, hoisted out of the kernel.
    inv_deg = 1.0 / jnp.maximum(jnp.sum(adj, axis=1, keepdims=True), 1.0)
    inv_deg_p = jnp.zeros((N_p, 1), jnp.float32).at[:N, :].set(
        inv_deg.astype(jnp.float32))

    # int8 adjacency (0/1 -> exact); zero padding contributes nothing.
    adj_p = jnp.zeros((N_p, N_p), jnp.int8).at[:N, :N].set(
        adj.astype(jnp.int8))
    feats_p = jnp.zeros((N_p, F_p), compute_dtype).at[:N, :F].set(
        features.astype(compute_dtype))
    w_self_p = jnp.zeros((F_p, E_p), compute_dtype).at[:F, :E].set(
        weight[:F, :].astype(compute_dtype))
    w_neigh_p = jnp.zeros((F_p, E_p), compute_dtype).at[:F, :E].set(
        weight[F:, :].astype(compute_dtype))
    return adj_p, feats_p, inv_deg_p, w_self_p, w_neigh_p


@functools.partial(jax.jit, static_argnames=("tile_n", "tile_k", "resident"))
def _encoder_forward_padded(adj_p, feats_p, inv_deg_p, w_self_p, w_neigh_p,
                            *, tile_n, tile_k, resident):
    N_p, F_p = feats_p.shape
    E_p = w_self_p.shape[1]
    grid = (N_p // tile_n, N_p // tile_k)

    if resident:
        kernel = functools.partial(_encoder_kernel_resident,
                                   tile_n=tile_n, tile_k=tile_k)
        in_specs = [
            # int8 adjacency tile, streamed along both grid axes.
            pl.BlockSpec((tile_n, tile_k), lambda i, k: (i, k)),
            # Full feature table, fetched once and kept VMEM-resident.
            pl.BlockSpec((N_p, F_p), lambda i, k: (0, 0),
                         pipeline_mode=pl.Buffered(1)),
            # 1/deg for this node tile (constant along k).
            pl.BlockSpec((tile_n, 1), lambda i, k: (i, 0),
                         pipeline_mode=pl.Buffered(1)),
            # Weights (constant along both grid axes).
            pl.BlockSpec((F_p, E_p), lambda i, k: (0, 0),
                         pipeline_mode=pl.Buffered(1)),
            pl.BlockSpec((F_p, E_p), lambda i, k: (0, 0),
                         pipeline_mode=pl.Buffered(1)),
        ]
        operands = (adj_p, feats_p, inv_deg_p, w_self_p, w_neigh_p)
    else:
        kernel = _encoder_kernel_streamed
        in_specs = [
            pl.BlockSpec((tile_n, tile_k), lambda i, k: (i, k)),       # adj
            pl.BlockSpec((tile_k, F_p), lambda i, k: (k, 0)),          # neigh feats
            pl.BlockSpec((tile_n, F_p), lambda i, k: (i, 0),
                         pipeline_mode=pl.Buffered(1)),                # self feats
            pl.BlockSpec((tile_n, 1), lambda i, k: (i, 0),
                         pipeline_mode=pl.Buffered(1)),                # 1/deg
            pl.BlockSpec((F_p, E_p), lambda i, k: (0, 0),
                         pipeline_mode=pl.Buffered(1)),                # W_self
            pl.BlockSpec((F_p, E_p), lambda i, k: (0, 0),
                         pipeline_mode=pl.Buffered(1)),                # W_neigh
        ]
        operands = (adj_p, feats_p, feats_p, inv_deg_p, w_self_p, w_neigh_p)

    out_p = pl.pallas_call(
        kernel,
        out_shape=jax.ShapeDtypeStruct((N_p, E_p), jnp.float32),
        grid_spec=pltpu.PrefetchScalarGridSpec(
            num_scalar_prefetch=0,
            grid=grid,
            in_specs=in_specs,
            out_specs=pl.BlockSpec((tile_n, E_p), lambda i, k: (i, 0)),
            scratch_shapes=[pltpu.VMEM((tile_n, F_p), jnp.float32)],
        ),
        compiler_params=pltpu.CompilerParams(
            dimension_semantics=("parallel", "arbitrary"),
            vmem_limit_bytes=48 * 1024 * 1024),
    )(*operands)
    return out_p


def encoder_forward(features, adj, weight, *, tile_n=256, tile_k=256,
                    compute_dtype=jnp.bfloat16,
                    feat_resident_budget_bytes=8 * 1024 * 1024):
    """features: [N, F] f32, adj: [N, N] 0/1 f32, weight: [2F, E] f32 -> [N, E] f32."""
    N, F = features.shape
    E = weight.shape[1]

    # Clamp tiles for small graphs (stay multiples of 128 for layout/MXU).
    n_cap = _round_up(N, 128)
    tile_n = max(128, min(tile_n, n_cap))
    tile_k = max(128, min(tile_k, n_cap))

    adj_p, feats_p, inv_deg_p, w_self_p, w_neigh_p = prepare_encoder_inputs(
        features, adj, weight, tile_n=tile_n, tile_k=tile_k,
        compute_dtype=compute_dtype)

    feat_bytes = feats_p.shape[0] * feats_p.shape[1] * feats_p.dtype.itemsize
    resident = feat_bytes <= feat_resident_budget_bytes

    out_p = _encoder_forward_padded(adj_p, feats_p, inv_deg_p, w_self_p,
                                    w_neigh_p, tile_n=tile_n, tile_k=tile_k,
                                    resident=resident)
    return out_p[:N, :E]


def encoder_reference(features, adj, weight):
    """Pure-JAX f32 reference mirroring the PyTorch forward."""
    deg = jnp.maximum(jnp.sum(adj, axis=1, keepdims=True), 1.0)
    neigh = (adj @ features) / deg
    combined = jnp.concatenate([features, neigh], axis=1)
    return jax.nn.relu(combined @ weight)


if __name__ == "__main__":
    key = jax.random.PRNGKey(0)
    k_feat, k_adj, k_w = jax.random.split(key, 3)

    N = 16        # number of nodes
    F_DIM = 32    # feature_dim
    E_DIM = 32    # embed_dim

    features = jax.random.normal(k_feat, (N, F_DIM), dtype=jnp.float32)
    # Dense 0/1 adjacency (deterministic), ~30% density.
    adj = (jax.random.uniform(k_adj, (N, N)) < 0.3).astype(jnp.float32)

    # Xavier-uniform init for weight [2F, E] (matches init.xavier_uniform_).
    fan_in, fan_out = 2 * F_DIM, E_DIM
    bound = (6.0 / (fan_in + fan_out)) ** 0.5
    weight = jax.random.uniform(
        k_w, (2 * F_DIM, E_DIM), minval=-bound, maxval=bound, dtype=jnp.float32)

    ref = encoder_reference(features, adj, weight)

    # Resident-feature-table path (default for small graphs).
    out = encoder_forward(features, adj, weight)
    out = jax.block_until_ready(out)
    assert out.shape == (N, E_DIM)
    # bf16 matmul operands (f32 accumulation) -> relaxed tolerance vs f32 ref.
    assert jnp.allclose(out, ref, atol=5e-2, rtol=5e-2), "mismatch (resident)"

    # Streamed fallback path (feature table larger than the VMEM budget).
    out2 = encoder_forward(features, adj, weight, feat_resident_budget_bytes=0)
    out2 = jax.block_until_ready(out2)
    assert jnp.allclose(out2, ref, atol=5e-2, rtol=5e-2), "mismatch (streamed)"

    print("KERNEL_OK")
</pallas_src>

<mosaic_0001>
module attributes {stable_mosaic.version = 11 : i64} {
  func.func @_encoder_kernel_resident(%arg0: i32, %arg1: i32, %arg2: memref<128x128xi8, #tpu.memory_space<vmem>>, %arg3: memref<128x128xbf16, #tpu.memory_space<vmem>>, %arg4: memref<128x1xf32, #tpu.memory_space<vmem>>, %arg5: memref<128x128xbf16, #tpu.memory_space<vmem>>, %arg6: memref<128x128xbf16, #tpu.memory_space<vmem>>, %arg7: memref<128x128xf32, #tpu.memory_space<vmem>>, %arg8: memref<128x128xf32, #tpu.memory_space<vmem>>) attributes {dimension_semantics = [#tpu.dimension_semantics<parallel>, #tpu.dimension_semantics<arbitrary>], iteration_bounds = array<i64: 1, 1>, scalar_prefetch = 0 : i64, scratch_operands = 1 : i64, tpu.core_type = #tpu.core_type<tc>, window_params = [{transform_indices = @transform_0, window_bounds = array<i64: 128, 128>}, {pipeline_mode = #tpu.pipeline_mode<synchronous>, transform_indices = @transform_1, window_bounds = array<i64: 128, 128>}, {pipeline_mode = #tpu.pipeline_mode<synchronous>, transform_indices = @transform_2, window_bounds = array<i64: 128, 1>}, {pipeline_mode = #tpu.pipeline_mode<synchronous>, transform_indices = @transform_3, window_bounds = array<i64: 128, 128>}, {pipeline_mode = #tpu.pipeline_mode<synchronous>, transform_indices = @transform_4, window_bounds = array<i64: 128, 128>}, {transform_indices = @transform_5, window_bounds = array<i64: 128, 128>}]} {
    %c0_i32 = arith.constant 0 : i32
    %0 = arith.cmpi eq, %arg1, %c0_i32 : i32
    %1 = arith.extui %0 : i1 to i32
    %c0_i32_0 = arith.constant 0 : i32
    %2 = arith.cmpi ne, %1, %c0_i32_0 : i32
    scf.if %2 {
      %cst_9 = arith.constant 0.000000e+00 : f32
      %16 = vector.broadcast %cst_9 : f32 to vector<128x128xf32>
      %c0_10 = arith.constant 0 : index
      %c0_11 = arith.constant 0 : index
      %17 = vector.load %arg8[%c0_10, %c0_11] : memref<128x128xf32, #tpu.memory_space<vmem>>, vector<128x128xf32>
      tpu.vector_store %arg8[%c0_10, %c0_11], %16 {strides = array<i32>} : memref<128x128xf32, #tpu.memory_space<vmem>>, vector<128x128xf32>,
      %c128_i32_12 = arith.constant 128 : i32
      %18 = arith.muli %arg0, %c128_i32_12 : i32
      %19 = tpu.assume_multiple %18, 128 : i32
      %20 = arith.index_cast %19 : i32 to index
      %c0_13 = arith.constant 0 : index
      %21 = vector.load %arg3[%20, %c0_13] : memref<128x128xbf16, #tpu.memory_space<vmem>>, vector<128x128xbf16>
      %c0_14 = arith.constant 0 : index
      %c0_15 = arith.constant 0 : index
      %22 = vector.load %arg5[%c0_14, %c0_15] : memref<128x128xbf16, #tpu.memory_space<vmem>>, vector<128x128xbf16>
      %cst_16 = arith.constant dense<0.000000e+00> : vector<128x128xf32>
      %23 = tpu.matmul %21, %22, %cst_16 {dimension_numbers = #tpu.dot_dimension_numbers<[1], [0], [0], [1], [0, 0, 1, 1], [], []>} : vector<128x128xbf16>, vector<128x128xbf16>, vector<128x128xf32> -> vector<128x128xf32>
      %c0_17 = arith.constant 0 : index
      %c0_18 = arith.constant 0 : index
      %24 = vector.load %arg7[%c0_17, %c0_18] : memref<128x128xf32, #tpu.memory_space<vmem>>, vector<128x128xf32>
      tpu.vector_store %arg7[%c0_17, %c0_18], %23 {strides = array<i32>} : memref<128x128xf32, #tpu.memory_space<vmem>>, vector<128x128xf32>,
    } else {
    }
    %c128_i32 = arith.constant 128 : i32
    %3 = arith.muli %arg1, %c128_i32 : i32
    %4 = tpu.assume_multiple %3, 128 : i32
    %5 = arith.index_cast %4 : i32 to index
    %c0 = arith.constant 0 : index
    %6 = vector.load %arg3[%5, %c0] : memref<128x128xbf16, #tpu.memory_space<vmem>>, vector<128x128xbf16>
    %c0_1 = arith.constant 0 : index
    %c0_2 = arith.constant 0 : index
    %7 = vector.load %arg8[%c0_1, %c0_2] : memref<128x128xf32, #tpu.memory_space<vmem>>, vector<128x128xf32>
    %c0_3 = arith.constant 0 : index
    %c0_4 = arith.constant 0 : index
    %8 = vector.load %arg2[%c0_3, %c0_4] : memref<128x128xi8, #tpu.memory_space<vmem>>, vector<128x128xi8>
    %9 = arith.sitofp %8 : vector<128x128xi8> to vector<128x128xbf16>
    %cst = arith.constant dense<0.000000e+00> : vector<128x128xf32>
    %10 = tpu.matmul %9, %6, %cst {dimension_numbers = #tpu.dot_dimension_numbers<[1], [0], [0], [1], [0, 0, 1, 1], [], []>} : vector<128x128xbf16>, vector<128x128xbf16>, vector<128x128xf32> -> vector<128x128xf32>
    %11 = arith.addf %7, %10 : vector<128x128xf32>
    %c0_5 = arith.constant 0 : index
    %c0_6 = arith.constant 0 : index
    %12 = vector.load %arg8[%c0_5, %c0_6] : memref<128x128xf32, #tpu.memory_space<vmem>>, vector<128x128xf32>
    tpu.vector_store %arg8[%c0_5, %c0_6], %11 {strides = array<i32>} : memref<128x128xf32, #tpu.memory_space<vmem>>, vector<128x128xf32>,
    %c0_i32_7 = arith.constant 0 : i32
    %13 = arith.cmpi eq, %arg1, %c0_i32_7 : i32
    %14 = arith.extui %13 : i1 to i32
    %c0_i32_8 = arith.constant 0 : i32
    %15 = arith.cmpi ne, %14, %c0_i32_8 : i32
    scf.if %15 {
      %c0_9 = arith.constant 0 : index
      %c0_10 = arith.constant 0 : index
      %16 = vector.load %arg8[%c0_9, %c0_10] : memref<128x128xf32, #tpu.memory_space<vmem>>, vector<128x128xf32>
      %c0_11 = arith.constant 0 : index
      %c0_12 = arith.constant 0 : index
      %17 = vector.load %arg4[%c0_11, %c0_12] : memref<128x1xf32, #tpu.memory_space<vmem>>, vector<128x1xf32>
      %18 = vector.broadcast %17 : vector<128x1xf32> to vector<128x128xf32>
      %19 = arith.mulf %16, %18 : vector<128x128xf32>
      %20 = arith.truncf %19 : vector<128x128xf32> to vector<128x128xbf16>
      %c0_13 = arith.constant 0 : index
      %c0_14 = arith.constant 0 : index
      %21 = vector.load %arg7[%c0_13, %c0_14] : memref<128x128xf32, #tpu.memory_space<vmem>>, vector<128x128xf32>
      %c0_15 = arith.constant 0 : index
      %c0_16 = arith.constant 0 : index
      %22 = vector.load %arg6[%c0_15, %c0_16] : memref<128x128xbf16, #tpu.memory_space<vmem>>, vector<128x128xbf16>
      %cst_17 = arith.constant dense<0.000000e+00> : vector<128x128xf32>
      %23 = tpu.matmul %20, %22, %cst_17 {dimension_numbers = #tpu.dot_dimension_numbers<[1], [0], [0], [1], [0, 0, 1, 1], [], []>} : vector<128x128xbf16>, vector<128x128xbf16>, vector<128x128xf32> -> vector<128x128xf32>
      %24 = arith.addf %21, %23 : vector<128x128xf32>
      %cst_18 = arith.constant 0.000000e+00 : f32
      %25 = vector.broadcast %cst_18 : f32 to vector<128x128xf32>
      %26 = arith.maximumf %24, %25 : vector<128x128xf32>
      %c0_19 = arith.constant 0 : index
      %c0_20 = arith.constant 0 : index
      %27 = vector.load %arg7[%c0_19, %c0_20] : memref<128x128xf32, #tpu.memory_space<vmem>>, vector<128x128xf32>
      tpu.vector_store %arg7[%c0_19, %c0_20], %26 {strides = array<i32>} : memref<128x128xf32, #tpu.memory_space<vmem>>, vector<128x128xf32>,
    } else {
    }
    return
  }
  func.func @transform_0(%arg0: i32, %arg1: i32) -> (i32, i32) {
    %c0_i32 = arith.constant 0 : i32
    return %arg0, %arg1 : i32, i32
  }
  func.func @transform_1(%arg0: i32, %arg1: i32) -> (i32, i32) {
    %c0_i32 = arith.constant 0 : i32
    %c0_i32_0 = arith.constant 0 : i32
    %c0_i32_1 = arith.constant 0 : i32
    return %c0_i32, %c0_i32_0 : i32, i32
  }
  func.func @transform_2(%arg0: i32, %arg1: i32) -> (i32, i32) {
    %c0_i32 = arith.constant 0 : i32
    %c0_i32_0 = arith.constant 0 : i32
    return %arg0, %c0_i32 : i32, i32
  }
  func.func @transform_3(%arg0: i32, %arg1: i32) -> (i32, i32) {
    %c0_i32 = arith.constant 0 : i32
    %c0_i32_0 = arith.constant 0 : i32
    %c0_i32_1 = arith.constant 0 : i32
    return %c0_i32, %c0_i32_0 : i32, i32
  }
  func.func @transform_4(%arg0: i32, %arg1: i32) -> (i32, i32) {
    %c0_i32 = arith.constant 0 : i32
    %c0_i32_0 = arith.constant 0 : i32
    %c0_i32_1 = arith.constant 0 : i32
    return %c0_i32, %c0_i32_0 : i32, i32
  }
  func.func @transform_5(%arg0: i32, %arg1: i32) -> (i32, i32) {
    %c0_i32 = arith.constant 0 : i32
    %c0_i32_0 = arith.constant 0 : i32
    return %arg0, %c0_i32 : i32, i32
  }
}

</mosaic_0001>

<bundles_post_ra>
// kernel: _encoder_forward_padded.1
= control target key start
LH: loop header
LB: loop body
LE: loop exit
PB: predicated region body
PF: predicated region fallthrough
CT: control target
= control target key end

     0   :  { %10 = vsyncpa [#allocation4], 0  ;;  %s1470_s0 = inlined_call_operand.hbm [shape: s8[128,128], index: 0, kind: input, shape index: {}]   ;;  %s1471_s1 = inlined_call_operand.vmem [shape: bf16[128,128], index: 1, kind: input, shape index: {}]   ;;  %s1472_s2 = inlined_call_operand.vmem [shape: f32[128,1], index: 2, kind: input, shape index: {}]   ;;  %s1473_s3 = inlined_call_operand.vmem [shape: bf16[128,128], index: 3, kind: input, shape index: {}]   ;;  %s1474_s4 = inlined_call_operand.hbm [shape: bf16[128,128], index: 4, kind: input, shape index: {}]   ;;  %s1475_s5 = inlined_call_operand.hbm [shape: f32[128,128], index: 5, kind: output, shape index: {}]  }
   0x1   :  { %11 = vsyncpa [#allocation7], 0 }
   0x2   :  { %12 = vsyncpa [#allocation5], 0  ;;  %s1266_s18 = smov [#allocation3]   ;;  %s1194_s22 = scalar_lea.hbm %s1470_s0, 512 }
   0x3   :  { %s18_s19 = sshll.u32 %s1266_s18, 4  ;;  %p1195_p0 = scmp.ne.s32.totalorder %s1470_s0, %s1194_s22  ;;  %s19_s19 = int_to_ptr.vmem [resolvable:$true] %s18_s19 }
   0x4   :  { %p1198_p1 = scmp.lt.u32.totalorder %s1194_s22, %s1470_s0 }
   0x6   :  { %p1200_p2 = pnand %p1198_p1, %p1195_p0 }
   0x8   :  { %1203 = shalt.err (!%p1200_p2)
}
   0x9   :  { %s1204_s27 = scalar_lea.vmem %s19_s19, 512  ;;  %p1209_p4 = scmp.lt.s32.totalorder %s19_s19, %s19_s19 }
   0xa   :  { %p1205_p3 = scmp.ne.s32.totalorder %s19_s19, %s1204_s27  ;;  %p1210_p5 = scmp.lt.s32.totalorder %s1204_s27, %s1204_s27 }
   0xc   :  { %p1211_p6 = por %p1210_p5, %p1209_p4 }
   0xe   :  { %p1212_p7 = pnand %p1211_p6, %p1205_p3 }
  0x10   :  { %1215 = shalt.err (!%p1212_p7)
}
  0x11   :  { %s1267_s28 = smov 128   ;;  %s1268_s29 = smov 8  }
  0x12   :  { %24 = dma.hbm_to_vmem [thread:$0]  %s1470_s0, 512, %s19_s19, [#allocation4], %s1267_s28, %s1267_s28, %s1268_s29  }
  0x13   :  { %s1269_s7 = smov [#allocation6]   ;;  %s1216_s11 = scalar_lea.hbm %s1474_s4, 1024 }
  0x14   :  { %s36_s8 = sshll.u32 %s1269_s7, 4  ;;  %p1217_p8 = scmp.ne.s32.totalorder %s1474_s4, %s1216_s11  ;;  %s37_s8 = int_to_ptr.vmem [resolvable:$true] %s36_s8 }
  0x15   :  { %p1220_p9 = scmp.lt.u32.totalorder %s1216_s11, %s1474_s4 }
  0x17   :  { %p1222_p10 = pnand %p1220_p9, %p1217_p8 }
  0x19   :  { %1225 = shalt.err (!%p1222_p10)
}
  0x1a   :  { %s1226_s16 = scalar_lea.vmem %s37_s8, 1024  ;;  %p1231_p12 = scmp.lt.s32.totalorder %s37_s8, %s37_s8 }
  0x1b   :  { %p1227_p11 = scmp.ne.s32.totalorder %s37_s8, %s1226_s16  ;;  %p1232_p13 = scmp.lt.s32.totalorder %s1226_s16, %s1226_s16 }
  0x1d   :  { %p1233_p0 = por %p1232_p13, %p1231_p12 }
  0x1f   :  { %p1234_p1 = pnand %p1233_p0, %p1227_p11 }
  0x21   :  { %1237 = shalt.err (!%p1234_p1)
}
  0x22   :  { %s1270_s0 = smov 64   ;;  %s1271_s17 = smov 4  }
  0x23   :  { %42 = dma.hbm_to_vmem [thread:$0]  %s1474_s4, 1024, %s37_s8, [#allocation7], %s1270_s0, %s1270_s0, %s1271_s17  }
  0x24   :  { %1260 = dma.done.wait [#allocation4], 512  }
  0x25   :  { %1261 = vsyncadd [#allocation4], 4294966784 }
  0x26   :  { %1262 = dma.done.wait [#allocation7], 1024  }
  0x27   :  { %1263 = vsyncadd [#allocation7], 4294966272  ;;  %v1272_v0 = vmov 0   ;;  %v1162_v1 = vld [vmem:[%s1471_s1] sm:$0xff]   ;;  %v1163_v2 = vld [vmem:[%s1471_s1 + $0x8] sm:$0xff]  }
  0x28   :  { %1161 = vset.pattern.permute.xlu1 %v1272_v0  ;;  %1160 = vset.pattern.permute.xlu0 %v1272_v0  ;;  %v1164_v3 = vld [vmem:[%s1471_s1 + $0x10] sm:$0xff]   ;;  %v1165_v4 = vld [vmem:[%s1471_s1 + $0x18] sm:$0xff]   ;;  %v1343_v5 = vld [vmem:[#allocation3] sm:$0xff] }
  0x29   :  { %1040 = vmatprep.subr.bf16.mxu1 %v1162_v1  ;;  %v357_v6 = vunpack.c.l.s8.bf16 %v1343_v5  ;;  %v571_v7 = vld [vmem:[%s1472_s2 + $0x50] sm:$0xff]  ;;  %v569_v8 = vld [vmem:[%s1472_s2 + $0x40] sm:$0xff]  ;;  %v572_v9 = vld [vmem:[%s1472_s2 + $0x58] sm:$0xff]  ;;  %v358_v30 = vunpack.c.h.s8.bf16 %v1343_v5 }
  0x2a   :  { %1041 = vmatpush3.bf16.msra.mxu1 %v1162_v1  ;;  %629 = vperm.xlu1 %1161, %v571_v7   ;;  %v570_v10 = vld [vmem:[%s1472_s2 + $0x48] sm:$0xff]  ;;  %v1166_v11 = vld [vmem:[%s1471_s1 + $0x20] sm:$0xff]   ;;  %v1168_v17 = vld [vmem:[%s1471_s1 + $0x30] sm:$0xff]  }
  0x2b   :  { %1042 = vmatprep.subr.bf16.mxu1 %v1163_v2  ;;  %619 = vperm.xlu0 %1160, %v569_v8   ;;  %v1167_v12 = vld [vmem:[%s1471_s1 + $0x28] sm:$0xff]   ;;  %v561_v14 = vld [vmem:[%s1472_s2] sm:$0xff]  ;;  %v564_v18 = vld [vmem:[%s1472_s2 + $0x18] sm:$0xff] }
  0x2c   :  { %1056 = vmatprep.mubr.bf16.mxu1 %v357_v6  ;;  %v562_v13 = vld [vmem:[%s1472_s2 + $0x8] sm:$0xff]  ;;  %v1170_v15 = vld [vmem:[%s1473_s3] sm:$0xff]   ;;  %v563_v19 = vld [vmem:[%s1472_s2 + $0x10] sm:$0xff] }
  0x2d   :  { %v1171_v16 = vld [vmem:[%s1473_s3 + $0x8] sm:$0xff]   ;;  %1008 = vmatprep.subr.bf16.mxu0 %v1170_v15  ;;  %v1172_v20 = vld [vmem:[%s1473_s3 + $0x10] sm:$0xff]   ;;  %v1169_v22 = vld [vmem:[%s1471_s1 + $0x38] sm:$0xff]  }
  0x2e   :  { %1043 = vmatpush3.bf16.msra.mxu1 %v1163_v2  ;;  %634 = vperm.xlu1 %1161, %v572_v9   ;;  %v574_v21 = vld [vmem:[%s1472_s2 + $0x68] sm:$0xff]  ;;  %v573_v23 = vld [vmem:[%s1472_s2 + $0x60] sm:$0xff]  ;;  %v1173_v25 = vld [vmem:[%s1473_s3 + $0x18] sm:$0xff]  }
  0x2f   :  { %1044 = vmatprep.subr.bf16.mxu1 %v1164_v3  ;;  %624 = vperm.xlu0 %1160, %v570_v10   ;;  %v1178_v24 = vld [vmem:[%s1471_s1] sm:$0xff]   ;;  %v354_v26 = vld [vmem:[#allocation3 + $0x8] sm:$0xff]  ;;  %v576_v27 = vld [vmem:[%s1472_s2 + $0x78] sm:$0xff] }
  0x30   :  { %1009 = vmatpush3.bf16.msra.mxu0 %v1170_v15  ;;  %1024 = vmatprep.mubr.bf16.mxu0 %v1178_v24  ;;  %v575_v28 = vld [vmem:[%s1472_s2 + $0x70] sm:$0xff]  ;;  %v1174_v29 = vld [vmem:[%s1473_s3 + $0x20] sm:$0xff]   ;;  %v359_v32 = vunpack.c.l.s8.bf16 %v354_v26  ;;  %v566_v33 = vld [vmem:[%s1472_s2 + $0x28] sm:$0xff]  ;;  %v360_v41 = vunpack.c.h.s8.bf16 %v354_v26 }
  0x31   :  { %1010 = vmatprep.subr.bf16.mxu0 %v1171_v16  ;;  %v1180_v31 = vld [vmem:[#allocation6] sm:$0xff]   ;;  %v568_v35 = vld [vmem:[%s1472_s2 + $0x38] sm:$0xff]  ;;  %v1175_v36 = vld [vmem:[%s1473_s3 + $0x28] sm:$0xff]  }
  0x32   :  { %1045 = vmatpush3.bf16.msra.mxu1 %v1164_v3  ;;  %584 = vperm.xlu1 %1161, %v562_v13   ;;  %v565_v34 = vld [vmem:[%s1472_s2 + $0x20] sm:$0xff]  ;;  %v355_v37 = vld [vmem:[#allocation3 + $0x10] sm:$0xff]  ;;  %v1181_v39 = vld [vmem:[#allocation6 + $0x8] sm:$0xff]  }
  0x33   :  { %1046 = vmatprep.subr.bf16.mxu1 %v1165_v4  ;;  %579 = vperm.xlu0 %1160, %v561_v14   ;;  %v567_v38 = vld [vmem:[%s1472_s2 + $0x30] sm:$0xff]  ;;  %v361_v42 = vunpack.c.l.s8.bf16 %v355_v37  ;;  %v1177_v44 = vld [vmem:[%s1473_s3 + $0x38] sm:$0xff]   ;;  %v362_v47 = vunpack.c.h.s8.bf16 %v355_v37  ;;  %v1179_v49 = vld [vmem:[%s1471_s1 + $0x8] sm:$0xff]  }
  0x34   :  { %1011 = vmatpush3.bf16.msra.mxu0 %v1171_v16  ;;  %v1176_v40 = vld [vmem:[%s1473_s3 + $0x30] sm:$0xff]   ;;  %v1185_v45 = vld [vmem:[#allocation6 + $0x18] sm:$0xff]   ;;  %v1188_v50 = vld [vmem:[#allocation6 + $0x20] sm:$0xff]  }
  0x35   :  { %1012 = vmatprep.subr.bf16.mxu0 %v1172_v20  ;;  %v1184_v43 = vld [vmem:[#allocation6 + $0x10] sm:$0xff]   ;;  %v356_v46 = vld [vmem:[#allocation3 + $0x18] sm:$0xff]  ;;  %v1189_v52 = vld [vmem:[#allocation6 + $0x28] sm:$0xff]  }
  0x36   :  { %1047 = vmatpush3.bf16.msra.mxu1 %v1165_v4  ;;  %594 = vperm.xlu1 %1161, %v564_v18   ;;  %v363_v48 = vunpack.c.l.s8.bf16 %v356_v46  ;;  %v1182_v51 = vld [vmem:[%s1471_s1 + $0x10] sm:$0xff]   ;;  %v364_v53 = vunpack.c.h.s8.bf16 %v356_v46  ;;  %v1183_v54 = vld [vmem:[%s1471_s1 + $0x18] sm:$0xff]   ;;  %v1186_v55 = vld [vmem:[%s1471_s1 + $0x20] sm:$0xff]  }
  0x37   :  { %1048 = vmatprep.subr.bf16.mxu1 %v1166_v11  ;;  %589 = vperm.xlu0 %1160, %v563_v19   ;;  %v1187_v56 = vld [vmem:[%s1471_s1 + $0x28] sm:$0xff]   ;;  %v1190_v57 = vld [vmem:[%s1471_s1 + $0x30] sm:$0xff]   ;;  %v1191_v58 = vld [vmem:[%s1471_s1 + $0x38] sm:$0xff]   ;;  %s1273_s1 = smov [#allocation8]  }
  0x38   :  { %1013 = vmatpush3.bf16.msra.mxu0 %v1172_v20  ;;  %v1192_v59 = vld [vmem:[#allocation6 + $0x30] sm:$0xff]   ;;  %v1193_v60 = vld [vmem:[#allocation6 + $0x38] sm:$0xff]   ;;  %s911_s23 = sshll.u32 %s1273_s1, 4  ;;  %s912_s23 = int_to_ptr.vmem [resolvable:$true] %s911_s23 }
  0x39   :  { %1014 = vmatprep.subr.bf16.mxu0 %v1173_v25  ;;  %s1238_s24 = scalar_lea.vmem %s912_s23, 2048  ;;  %p1243_p3 = scmp.lt.s32.totalorder %s912_s23, %s912_s23 }
  0x3a   :  { %1049 = vmatpush3.bf16.msra.mxu1 %v1166_v11  ;;  %644 = vperm.xlu1 %1161, %v574_v21   ;;  %p1239_p2 = scmp.ne.s32.totalorder %s912_s23, %s1238_s24  ;;  %p1244_p4 = scmp.lt.s32.totalorder %s1238_s24, %s1238_s24 }
  0x3b   :  { %1050 = vmatprep.subr.bf16.mxu1 %v1167_v12  ;;  %639 = vperm.xlu0 %1160, %v573_v23  }
  0x3c   :  { %1015 = vmatpush3.bf16.msra.mxu0 %v1173_v25  ;;  %p1245_p5 = por %p1244_p4, %p1243_p3 }
  0x3d   :  { %1016 = vmatprep.subr.bf16.mxu0 %v1174_v29 }
  0x3e   :  { %1051 = vmatpush3.bf16.msra.mxu1 %v1167_v12  ;;  %654 = vperm.xlu1 %1161, %v576_v27   ;;  %p1246_p6 = pnand %p1245_p5, %p1239_p2 }
  0x3f   :  { %1052 = vmatprep.subr.bf16.mxu1 %v1168_v17  ;;  %649 = vperm.xlu0 %1160, %v575_v28  }
  0x40   :  { %1017 = vmatpush3.bf16.msra.mxu0 %v1174_v29 }
  0x41   :  { %1018 = vmatprep.subr.bf16.mxu0 %v1175_v36 }
  0x42   :  { %1053 = vmatpush3.bf16.msra.mxu1 %v1168_v17  ;;  %604 = vperm.xlu1 %1161, %v566_v33  }
  0x43   :  { %1054 = vmatprep.subr.bf16.mxu1 %v1169_v22  ;;  %599 = vperm.xlu0 %1160, %v565_v34  }
  0x44   :  { %1019 = vmatpush3.bf16.msra.mxu0 %v1175_v36 }
  0x45   :  { %1020 = vmatprep.subr.bf16.mxu0 %v1176_v40 }
  0x46   :  { %1055 = vmatpush3.bf16.msra.mxu1 %v1169_v22  ;;  %614 = vperm.xlu1 %1161, %v568_v35  }
  0x47   :  { %1104 = vmatprep.subr.bf16.mxu1 %v1180_v31  ;;  %609 = vperm.xlu0 %1160, %v567_v38  }
  0x48   :  { %1021 = vmatpush3.bf16.msra.mxu0 %v1176_v40 }
  0x49   :  { %1057 = vmatmul.mubr.bf16.vlgmr.msra.gmra.mrb[0].mxu1 %v358_v30  ;;  %1022 = vmatprep.subr.bf16.mxu0 %v1177_v44 }
  0x4a   :  { %1060 = vmatprep.mubr.bf16.mxu1 %v359_v32  ;;  %1112 = vmatpush3.bf16.msra.mxu1 %v1180_v31 }
  0x4b   :  { %1105 = vmatprep.subr.bf16.mxu1 %v1181_v39 }
  0x4c   :  { %1023 = vmatpush3.bf16.msra.mxu0 %v1177_v44 }
  0x4d   :  { %1072 = vmatprep.subr.bf16.mxu0 %v1180_v31 }
  0x4e   :  { %1113 = vmatpush3.bf16.msra.mxu1 %v1181_v39 }
  0x4f   :  { %1106 = vmatprep.subr.bf16.mxu1 %v1184_v43  ;;  %1025 = vmatmul.mubr.bf16.vlgmr.msra.gmra.mrb[0].mxu0 %v1179_v49 }
  0x50   :  { %1073 = vmatpush3.bf16.msra.mxu0 %v1180_v31  ;;  %1028 = vmatprep.mubr.bf16.mxu0 %v1182_v51 }
  0x51   :  { %1061 = vmatmul.mubr.bf16.gmra.mrb[4].mxu1 %v360_v41  ;;  %1074 = vmatprep.subr.bf16.mxu0 %v1181_v39 }
  0x52   :  { %1064 = vmatprep.mubr.bf16.mxu1 %v361_v42  ;;  %1114 = vmatpush3.bf16.msra.mxu1 %v1184_v43 }
  0x53   :  { %1107 = vmatprep.subr.bf16.mxu1 %v1185_v45 }
  0x54   :  { %1075 = vmatpush3.bf16.msra.mxu0 %v1181_v39 }
  0x55   :  { %1076 = vmatprep.subr.bf16.mxu0 %v1184_v43 }
  0x56   :  { %1115 = vmatpush3.bf16.msra.mxu1 %v1185_v45 }
  0x57   :  { %1108 = vmatprep.subr.bf16.mxu1 %v1188_v50  ;;  %1029 = vmatmul.mubr.bf16.gmra.mrb[4].mxu0 %v1183_v54 }
  0x58   :  { %1077 = vmatpush3.bf16.msra.mxu0 %v1184_v43  ;;  %1032 = vmatprep.mubr.bf16.mxu0 %v1186_v55 }
  0x59   :  { %1065 = vmatmul.mubr.bf16.gmra.mrb[8].mxu1 %v362_v47  ;;  %1078 = vmatprep.subr.bf16.mxu0 %v1185_v45 }
  0x5a   :  { %1068 = vmatprep.mubr.bf16.mxu1 %v363_v48  ;;  %1116 = vmatpush3.bf16.msra.mxu1 %v1188_v50 }
  0x5b   :  { %1109 = vmatprep.subr.bf16.mxu1 %v1189_v52 }
  0x5c   :  { %1079 = vmatpush3.bf16.msra.mxu0 %v1185_v45 }
  0x5d   :  { %1080 = vmatprep.subr.bf16.mxu0 %v1188_v50 }
  0x5e   :  { %1117 = vmatpush3.bf16.msra.mxu1 %v1189_v52 }
  0x5f   :  { %1033 = vmatmul.mubr.bf16.gmra.mrb[8].mxu0 %v1187_v56  ;;  %1110 = vmatprep.subr.bf16.mxu1 %v1192_v59 }
  0x60   :  { %1081 = vmatpush3.bf16.msra.mxu0 %v1188_v50  ;;  %1036 = vmatprep.mubr.bf16.mxu0 %v1190_v57 }
  0x61   :  { %1069 = vmatmul.mubr.bf16.gmra.mrb[12].mxu1 %v364_v53  ;;  %1082 = vmatprep.subr.bf16.mxu0 %v1189_v52 }
  0x62   :  { %1118 = vmatpush3.bf16.msra.mxu1 %v1192_v59 }
  0x63   :  { %1111 = vmatprep.subr.bf16.mxu1 %v1193_v60 }
  0x64   :  { %1083 = vmatpush3.bf16.msra.mxu0 %v1189_v52 }
  0x65   :  { %1084 = vmatprep.subr.bf16.mxu0 %v1192_v59 }
  0x66   :  { %1119 = vmatpush3.bf16.msra.mxu1 %v1193_v60 }
  0x67   :  { %1037 = vmatmul.mubr.bf16.gmra.mrb[12].mxu0 %v1191_v58 }
  0x68   :  { %1085 = vmatpush3.bf16.msra.mxu0 %v1192_v59 }
  0x69   :  { %1086 = vmatprep.subr.bf16.mxu0 %v1193_v60 }
  0x6c   :  { %1087 = vmatpush3.bf16.msra.mxu0 %v1193_v60 }
  0xa9   :  { %v630_v61 = vpop.permute.xlu1 %629 }
  0xaa   :  { %v620_v62 = vpop.permute.xlu0 %619 }
  0xad   :  { %v635_v63 = vpop.permute.xlu1 %634 }
  0xae   :  { %v625_v0 = vpop.permute.xlu0 %624 }
  0xb1   :  { %v585_v1 = vpop.permute.xlu1 %584 }
  0xb2   :  { %v580_v2 = vpop.permute.xlu0 %579 }
  0xb5   :  { %v595_v3 = vpop.permute.xlu1 %594 }
  0xb6   :  { %v590_v4 = vpop.permute.xlu0 %589 }
  0xb9   :  { %v645_v5 = vpop.permute.xlu1 %644 }
  0xba   :  { %v640_v6 = vpop.permute.xlu0 %639 }
  0xbd   :  { %v655_v7 = vpop.permute.xlu1 %654 }
  0xbe   :  { %v650_v8 = vpop.permute.xlu0 %649 }
  0xc1   :  { %v605_v12 = vpop.permute.xlu1 %604 }
  0xc2   :  { %v600_v16 = vpop.permute.xlu0 %599 }
  0xc5   :  { %v615_v22 = vpop.permute.xlu1 %614 }
  0xc6   :  { %v610_v24 = vpop.permute.xlu0 %609 }
 0x11c   :  { %v1058_v9 = vpop.f32.mrb[0].mxu1 }
 0x11d   :  { %v447_v10 = vpop.f32.mrb[1].mxu1  ;;  %v659_v13 = vmul.f32 %v1058_v9, %v590_v4 }
 0x11e   :  { %v1059_v11 = vpop.f32.mrb[2].mxu1  ;;  %v657_v17 = vmul.f32 %v580_v2, %v447_v10 }
 0x11f   :  { %v660_v14 = vmul.f32 %v1059_v11, %v595_v3  ;;  %v450_v15 = vpop.f32.mrb[3].mxu1 }
 0x120   :  { %v658_v18 = vmul.f32 %v585_v1, %v450_v15 }
 0x121   :  { %v674_v19 = vpack.c.bf16 %v660_v14, %v659_v13 }
 0x122   :  { %v673_v20 = vpack.c.bf16 %v658_v18, %v657_v17 }
 0x124   :  { %v1062_v21 = vpop.f32.mrb[4].mxu1  ;;  %1088 = vmatprep.mubr.bf16.mxu0 %v673_v20 }
 0x125   :  { %v463_v23 = vpop.f32.mrb[5].mxu1  ;;  %1089 = vmatmul.mubr.bf16.vlgmr.msra.gmra.mrb[0].mxu0 %v674_v19  ;;  %v663_v26 = vmul.f32 %v1062_v21, %v610_v24 }
 0x126   :  { %v1063_v25 = vpop.f32.mrb[6].mxu1  ;;  %v661_v29 = vmul.f32 %v600_v16, %v463_v23 }
 0x127   :  { %v664_v27 = vmul.f32 %v1063_v25, %v615_v22  ;;  %v466_v28 = vpop.f32.mrb[7].mxu1 }
 0x128   :  { %v662_v30 = vmul.f32 %v605_v12, %v466_v28 }
 0x129   :  { %v676_v31 = vpack.c.bf16 %v664_v27, %v663_v26 }
 0x12a   :  { %v675_v32 = vpack.c.bf16 %v662_v30, %v661_v29 }
 0x12c   :  { %v1066_v33 = vpop.f32.mrb[8].mxu1  ;;  %1092 = vmatprep.mubr.bf16.mxu0 %v675_v32 }
 0x12d   :  { %v479_v34 = vpop.f32.mrb[9].mxu1  ;;  %1093 = vmatmul.mubr.bf16.gmra.mrb[4].mxu0 %v676_v31  ;;  %v667_v36 = vmul.f32 %v1066_v33, %v630_v61 }
 0x12e   :  { %v1067_v35 = vpop.f32.mrb[10].mxu1  ;;  %v665_v39 = vmul.f32 %v620_v62, %v479_v34 }
 0x12f   :  { %v668_v37 = vmul.f32 %v1067_v35, %v635_v63  ;;  %v482_v38 = vpop.f32.mrb[11].mxu1 }
 0x130   :  { %v666_v40 = vmul.f32 %v625_v0, %v482_v38 }
 0x131   :  { %v678_v41 = vpack.c.bf16 %v668_v37, %v667_v36 }
 0x132   :  { %v677_v42 = vpack.c.bf16 %v666_v40, %v665_v39  ;;  %v1034_v53 = vpop.f32.mrb[8].mxu0 }
 0x133   :  { %v269_v54 = vpop.f32.mrb[9].mxu0 }
 0x134   :  { %v1070_v43 = vpop.f32.mrb[12].mxu1  ;;  %1096 = vmatprep.mubr.bf16.mxu1 %v677_v42  ;;  %v1035_v55 = vpop.f32.mrb[10].mxu0 }
 0x135   :  { %v495_v44 = vpop.f32.mrb[13].mxu1  ;;  %1097 = vmatmul.mubr.bf16.vlgmr.msra.gmra.mrb[16].mxu1 %v678_v41  ;;  %v671_v46 = vmul.f32 %v1070_v43, %v650_v8  ;;  %v272_v56 = vpop.f32.mrb[11].mxu0 }
 0x136   :  { %v1071_v45 = vpop.f32.mrb[14].mxu1  ;;  %v669_v49 = vmul.f32 %v640_v6, %v495_v44 }
 0x137   :  { %v672_v47 = vmul.f32 %v1071_v45, %v655_v7  ;;  %v498_v48 = vpop.f32.mrb[15].mxu1 }
 0x138   :  { %v670_v50 = vmul.f32 %v645_v5, %v498_v48 }
 0x139   :  { %v680_v51 = vpack.c.bf16 %v672_v47, %v671_v46 }
 0x13a   :  { %v679_v52 = vpack.c.bf16 %v670_v50, %v669_v49  ;;  %v1038_v57 = vpop.f32.mrb[12].mxu0 }
 0x13b   :  { %v285_v58 = vpop.f32.mrb[13].mxu0 }
 0x13c   :  { %1100 = vmatprep.mubr.bf16.mxu1 %v679_v52  ;;  %v1039_v59 = vpop.f32.mrb[14].mxu0 }
 0x13d   :  { %1101 = vmatmul.mubr.bf16.gmra.mrb[20].mxu1 %v680_v51  ;;  %v288_v60 = vpop.f32.mrb[15].mxu0 }
 0x1f8   :  { %v1090_v61 = vpop.f32.mrb[0].mxu0 }
 0x1f9   :  { %v876_v62 = vmax.f32 %v1090_v61, 0.0  ;;  %v795_v63 = vpop.f32.mrb[1].mxu0 }
 0x1fa   :  { %v874_v0 = vmax.f32 %v795_v63, 0.0  ;;  %v1091_v1 = vpop.f32.mrb[2].mxu0 }
 0x1fb   :  { %892 = vst [vmem:[#allocation8 + $0x10] sm:$0xff] %v876_v62  ;;  %v877_v2 = vmax.f32 %v1091_v1, 0.0  ;;  %v798_v3 = vpop.f32.mrb[3].mxu0 }
 0x1fc   :  { %890 = vst [vmem:[#allocation8] sm:$0xff] %v874_v0  ;;  %v875_v4 = vmax.f32 %v798_v3, 0.0 }
 0x1fd   :  { %893 = vst [vmem:[#allocation8 + $0x18] sm:$0xff] %v877_v2 }
 0x1fe   :  { %891 = vst [vmem:[#allocation8 + $0x8] sm:$0xff] %v875_v4 }
 0x200   :  { %v1094_v5 = vpop.f32.mrb[4].mxu0 }
 0x201   :  { %v880_v6 = vmax.f32 %v1094_v5, 0.0  ;;  %v811_v7 = vpop.f32.mrb[5].mxu0 }
 0x202   :  { %v878_v8 = vmax.f32 %v811_v7, 0.0  ;;  %v1095_v9 = vpop.f32.mrb[6].mxu0 }
 0x203   :  { %896 = vst [vmem:[#allocation8 + $0x30] sm:$0xff] %v880_v6  ;;  %v881_v10 = vmax.f32 %v1095_v9, 0.0  ;;  %v814_v11 = vpop.f32.mrb[7].mxu0 }
 0x204   :  { %894 = vst [vmem:[#allocation8 + $0x20] sm:$0xff] %v878_v8  ;;  %v879_v12 = vmax.f32 %v814_v11, 0.0 }
 0x205   :  { %897 = vst [vmem:[#allocation8 + $0x38] sm:$0xff] %v881_v10 }
 0x206   :  { %895 = vst [vmem:[#allocation8 + $0x28] sm:$0xff] %v879_v12 }
 0x208   :  { %v1098_v13 = vpop.f32.mrb[16].mxu1 }
 0x209   :  { %v1122_v14 = vadd.f32 %v1098_v13, %v1034_v53  ;;  %v827_v15 = vpop.f32.mrb[17].mxu1 }
 0x20a   :  { %v1125_v16 = vadd.f32 %v827_v15, %v269_v54  ;;  %v1099_v17 = vpop.f32.mrb[18].mxu1 }
 0x20b   :  { %v884_v18 = vmax.f32 %v1122_v14, 0.0  ;;  %v1128_v19 = vadd.f32 %v1099_v17, %v1035_v55  ;;  %v830_v20 = vpop.f32.mrb[19].mxu1 }
 0x20c   :  { %v882_v21 = vmax.f32 %v1125_v16, 0.0  ;;  %v1131_v22 = vadd.f32 %v830_v20, %v272_v56 }
 0x20d   :  { %900 = vst [vmem:[#allocation8 + $0x50] sm:$0xff] %v884_v18  ;;  %v885_v23 = vmax.f32 %v1128_v19, 0.0 }
 0x20e   :  { %898 = vst [vmem:[#allocation8 + $0x40] sm:$0xff] %v882_v21  ;;  %v883_v24 = vmax.f32 %v1131_v22, 0.0 }
 0x20f   :  { %901 = vst [vmem:[#allocation8 + $0x58] sm:$0xff] %v885_v23 }
 0x210   :  { %899 = vst [vmem:[#allocation8 + $0x48] sm:$0xff] %v883_v24  ;;  %v1102_v25 = vpop.f32.mrb[20].mxu1 }
 0x211   :  { %v1134_v26 = vadd.f32 %v1102_v25, %v1038_v57  ;;  %v843_v27 = vpop.f32.mrb[21].mxu1 }
 0x212   :  { %v1137_v28 = vadd.f32 %v843_v27, %v285_v58  ;;  %v1103_v29 = vpop.f32.mrb[22].mxu1 }
 0x213   :  { %v888_v30 = vmax.f32 %v1134_v26, 0.0  ;;  %v1140_v31 = vadd.f32 %v1103_v29, %v1039_v59  ;;  %v846_v32 = vpop.f32.mrb[23].mxu1 }
 0x214   :  { %v886_v33 = vmax.f32 %v1137_v28, 0.0  ;;  %v1143_v34 = vadd.f32 %v846_v32, %v288_v60 }
 0x215   :  { %904 = vst [vmem:[#allocation8 + $0x70] sm:$0xff] %v888_v30  ;;  %v889_v35 = vmax.f32 %v1140_v31, 0.0 }
 0x216   :  { %902 = vst [vmem:[#allocation8 + $0x60] sm:$0xff] %v886_v33  ;;  %v887_v36 = vmax.f32 %v1143_v34, 0.0 }
 0x217   :  { %905 = vst [vmem:[#allocation8 + $0x78] sm:$0xff] %v889_v35 }
 0x218   :  { %903 = vst [vmem:[#allocation8 + $0x68] sm:$0xff] %v887_v36 }
 0x219   :  { %1249 = shalt.err (!%p1246_p6)
}
 0x21a   :  { %s1250_s26 = scalar_lea.hbm %s1475_s5, 2048 }
 0x21b   :  { %p1251_p7 = scmp.ne.s32.totalorder %s1475_s5, %s1250_s26  ;;  %p1254_p8 = scmp.lt.u32.totalorder %s1250_s26, %s1475_s5 }
 0x21d   :  { %p1256_p9 = pnand %p1254_p8, %p1251_p7 }
 0x21f   :  { %1259 = shalt.err (!%p1256_p9)
}
 0x220   :  { %917 = dma.vmem_to_hbm [thread:$0]  %s912_s23, 2048, %s1475_s5, [#allocation5], %s1267_s28, %s1267_s28, %s1268_s29  }
 0x221   :  { %1264 = dma.done.wait [#allocation5], 2048  }
 0x222   :  { %1265 = vsyncadd [#allocation5], 4294965248 }
 0x223   :  { %921 = vsyncpa [#allocation4], 1 }
 0x224   :  { %922 = vsyncpa [#allocation7], 1 }
 0x225   :  { %923 = vsyncpa [#allocation5], 1 }

</bundles_post_ra>
